<compile_context>
chip_gen: v6e
topology: v6e:2x2x1
jax: 0.10.0
libtpu: 0.0.40
codegen_flags: <defaults>
</compile_context>

<pallas_src>
import math
import jax
import jax.numpy as jnp
from jax.experimental import pallas as pl
from jax.experimental.pallas import tpu as pltpu


def _cdiv(a, b):
    return -(-a // b)


def _pe_kernel(x_ref, mat_ref, o_ref):
    # x_ref:   (tm, pack+1)   packed positions; last column is the constant 1.0
    # mat_ref: (pack+1, D)    [block-diag(100*div_term) ; pi/2 phase-bias row]
    # o_ref:   (tm, D)        lane-dense output tile (D is a multiple of 128)
    arg = jnp.dot(x_ref[...], mat_ref[...],
                  preferred_element_type=jnp.float32,
                  precision=jax.lax.Precision.HIGHEST)
    o_ref[...] = jnp.sin(arg).astype(o_ref.dtype)   # single transcendental per element


def positional_encoding(x, d_model, *, tm_target=2048, out_dtype=jnp.float32):
    """x: (bs, lens, 1) float -> (bs, lens, d_model)."""
    assert d_model % 2 == 0, "d_model must be even (PyTorch module assumes this)"
    bs, lens, last = x.shape
    assert last == 1, "PositionalEncoding expects scalar positions per token"
    n = bs * lens

    # ---- constants (trace-time, tiny) ----
    div_term = jnp.exp(
        jnp.arange(0, d_model, 2, dtype=jnp.float32) * -(math.log(10000.0) / d_model)
    )                                                       # (d_model//2,)
    scale = 100.0 * jnp.repeat(div_term, 2)                 # (d_model,), 100x folded in
    # cos(t) = sin(t + pi/2): even lanes 0 (sin), odd lanes pi/2 (cos)
    bias = jnp.tile(jnp.array([0.0, math.pi / 2.0], dtype=jnp.float32), d_model // 2)

    # ---- lane packing so the output last dim is a multiple of 128 ----
    pack = 128 // math.gcd(d_model, 128)                    # 1 when d_model % 128 == 0
    D = pack * d_model

    # Fold scale AND bias into one (pack+1, D) matrix:
    #   arg[r, c*d_model + j] = x[r, c] * scale[j] + bias[j]
    blockdiag = (jnp.eye(pack, dtype=jnp.float32)[:, :, None]
                 * scale[None, None, :]).reshape(pack, D)
    mat = jnp.concatenate([blockdiag, jnp.tile(bias, pack)[None, :]], axis=0)

    # ---- pack positions; pad ONLY the sub-`pack` tail (none when pack == 1) ----
    n_rows = _cdiv(n, pack)
    n_packed = n_rows * pack
    x2d = x.reshape(n, 1).astype(jnp.float32)
    if n_packed != n:
        x2d = jnp.pad(x2d, ((0, n_packed - n), (0, 0)))     # < pack rows, cheap
    x_aug = jnp.concatenate(
        [x2d.reshape(n_rows, pack), jnp.ones((n_rows, 1), jnp.float32)], axis=1)

    # ---- row tile: <= ~20 MiB double-buffered f32 output, multiple of 8 ----
    tm_cap = max(8, ((20 * 1024 * 1024) // (2 * 4 * D)) // 8 * 8)
    tm = min(tm_target, tm_cap, max(8, _cdiv(n_rows, 8) * 8))
    # keep >= 2 grid steps when possible so both v7x TensorCores get work
    if n_rows > 8:
        tm = min(tm, max(8, _cdiv(_cdiv(n_rows, 2), 8) * 8))
    grid = _cdiv(n_rows, tm)                                 # ragged last block is masked

    cost = pl.CostEstimate(
        flops=2 * n_rows * (pack + 1) * D,
        transcendentals=n_rows * D,
        bytes_accessed=(n_rows * (pack + 1) + (pack + 1) * D + n_rows * D) * 4,
    )

    out = pl.pallas_call(
        _pe_kernel,
        out_shape=jax.ShapeDtypeStruct((n_rows, D), out_dtype),
        grid_spec=pltpu.PrefetchScalarGridSpec(
            num_scalar_prefetch=0,
            grid=(grid,),
            in_specs=[
                pl.BlockSpec((tm, pack + 1), lambda i: (i, 0)),   # packed positions + ones
                pl.BlockSpec((pack + 1, D), lambda i: (0, 0)),    # scale/bias matrix (shared)
            ],
            out_specs=pl.BlockSpec((tm, D), lambda i: (i, 0)),
        ),
        compiler_params=pltpu.CompilerParams(
            dimension_semantics=("parallel",),
            vmem_limit_bytes=32 * 1024 * 1024,
        ),
        cost_estimate=cost,
    )(x_aug, mat)

    # packed slab (n_rows, pack*d_model) is row-major contiguous -> free reshape back
    out2d = out.reshape(n_packed, d_model)
    if n_packed != n:
        out2d = out2d[:n]                                    # only for sub-`pack` tails
    return out2d.reshape(bs, lens, d_model)


def _reference(x, d_model):
    bs, lens, _ = x.shape
    div_term = jnp.exp(
        jnp.arange(0, d_model, 2, dtype=jnp.float32) * -(math.log(10000.0) / d_model)
    )[None, :]
    xf = x.reshape(-1, 1).astype(jnp.float32) * 100.0
    pe = jnp.zeros((xf.shape[0], d_model), jnp.float32)
    pe = pe.at[:, 0::2].set(jnp.sin(xf * div_term))
    pe = pe.at[:, 1::2].set(jnp.cos(xf * div_term))
    return pe.reshape(bs, lens, d_model)


if __name__ == "__main__":
    key = jax.random.PRNGKey(0)

    # Case 1: d_model=32 -> pack=4 MXU-expand path, n % pack == 0 (no tail slice)
    bs, lens, d_model = 2, 8, 32
    x = jax.random.uniform(key, (bs, lens, 1), dtype=jnp.float32)
    out = jax.block_until_ready(positional_encoding(x, d_model))
    ref = _reference(x, d_model)
    assert out.shape == (bs, lens, d_model)
    # phase-shift (sin(t+pi/2)=cos t) and folded constants round slightly differently
    # than the reference's explicit cos; ~1e-5-level differences are expected.
    assert jnp.allclose(out, ref, atol=1e-4, rtol=1e-5), "mismatch vs reference (d_model=32)"

    # Case 2: d_model=128 -> pack=1 path, 2 grid steps with a ragged final row-block
    bs2, lens2, d_model2 = 2, 25, 128
    x2 = jax.random.uniform(jax.random.PRNGKey(1), (bs2, lens2, 1), dtype=jnp.float32)
    out2 = jax.block_until_ready(positional_encoding(x2, d_model2))
    ref2 = _reference(x2, d_model2)
    assert out2.shape == (bs2, lens2, d_model2)
    assert jnp.allclose(out2, ref2, atol=1e-4, rtol=1e-5), "mismatch vs reference (d_model=128)"

    # Case 3: n not a multiple of pack -> exercises the tail pad/slice path
    bs3, lens3, d_model3 = 3, 5, 32
    x3 = jax.random.uniform(jax.random.PRNGKey(2), (bs3, lens3, 1), dtype=jnp.float32)
    out3 = jax.block_until_ready(positional_encoding(x3, d_model3))
    ref3 = _reference(x3, d_model3)
    assert out3.shape == (bs3, lens3, d_model3)
    assert jnp.allclose(out3, ref3, atol=1e-4, rtol=1e-5), "mismatch vs reference (ragged n)"

    print("KERNEL_OK")
</pallas_src>

<mosaic_0001>
module attributes {stable_mosaic.version = 11 : i64} {
  func.func @_pe_kernel(%arg0: i32, %arg1: memref<8x5xf32, #tpu.memory_space<vmem>>, %arg2: memref<5x128xf32, #tpu.memory_space<vmem>>, %arg3: memref<8x128xf32, #tpu.memory_space<vmem>>) attributes {dimension_semantics = [#tpu.dimension_semantics<parallel>], iteration_bounds = array<i64: 1>, scalar_prefetch = 0 : i64, scratch_operands = 0 : i64, tpu.core_type = #tpu.core_type<tc>, window_params = [{transform_indices = @transform_0, window_bounds = array<i64: 8, 5>}, {pipeline_mode = #tpu.pipeline_mode<synchronous>, transform_indices = @transform_1, window_bounds = array<i64: 5, 128>}, {transform_indices = @transform_2, window_bounds = array<i64: 8, 128>}]} {
    %c0 = arith.constant 0 : index
    %c0_0 = arith.constant 0 : index
    %0 = vector.load %arg1[%c0, %c0_0] : memref<8x5xf32, #tpu.memory_space<vmem>>, vector<8x5xf32>
    %c0_1 = arith.constant 0 : index
    %c0_2 = arith.constant 0 : index
    %1 = vector.load %arg2[%c0_1, %c0_2] : memref<5x128xf32, #tpu.memory_space<vmem>>, vector<5x128xf32>
    %cst = arith.constant dense<0.000000e+00> : vector<8x128xf32>
    %2 = tpu.matmul %0, %1, %cst {dimension_numbers = #tpu.dot_dimension_numbers<[1], [0], [0], [1], [0, 0, 1, 1], [], []>, precision = #tpu.contract_precision<fp32>} : vector<8x5xf32>, vector<5x128xf32>, vector<8x128xf32> -> vector<8x128xf32>
    %3 = math.sin %2 : vector<8x128xf32>
    %c0_3 = arith.constant 0 : index
    %c0_4 = arith.constant 0 : index
    %4 = vector.load %arg3[%c0_3, %c0_4] : memref<8x128xf32, #tpu.memory_space<vmem>>, vector<8x128xf32>
    tpu.vector_store %arg3[%c0_3, %c0_4], %3 {strides = array<i32>} : memref<8x128xf32, #tpu.memory_space<vmem>>, vector<8x128xf32>,
    return
  }
  func.func @transform_0(%arg0: i32) -> (i32, i32) {
    %c0_i32 = arith.constant 0 : i32
    %c0_i32_0 = arith.constant 0 : i32
    return %arg0, %c0_i32 : i32, i32
  }
  func.func @transform_1(%arg0: i32) -> (i32, i32) {
    %c0_i32 = arith.constant 0 : i32
    %c0_i32_0 = arith.constant 0 : i32
    %c0_i32_1 = arith.constant 0 : i32
    return %c0_i32, %c0_i32_0 : i32, i32
  }
  func.func @transform_2(%arg0: i32) -> (i32, i32) {
    %c0_i32 = arith.constant 0 : i32
    %c0_i32_0 = arith.constant 0 : i32
    return %arg0, %c0_i32 : i32, i32
  }
}

</mosaic_0001>

<bundles_post_ra>
// kernel: tpu_custom_call.1
= control target key start
LH: loop header
LB: loop body
LE: loop exit
PB: predicated region body
PF: predicated region fallthrough
CT: control target
= control target key end

     0   :  { %7 = vsyncpa [#allocation3], 0  ;;  %s820_s0 = inlined_call_operand.hbm [shape: f32[4,5], index: 0, kind: input, shape index: {}]   ;;  %s821_s1 = inlined_call_operand.hbm [shape: f32[5,128], index: 1, kind: input, shape index: {}]   ;;  %s822_s2 = inlined_call_operand.hbm [shape: f32[4,128], index: 2, kind: output, shape index: {}]  }
   0x1   :  { %8 = vsyncpa [#allocation6], 0 }
   0x2   :  { %9 = vsyncpa [#allocation4], 0 }
   0x3   :  { %14 = vsyncadd [#allocation3], 64  ;;  %s750_s9 = smov [#allocation2]  }
   0x4   :  { %s15_s10 = sshll.u32 %s750_s9, 4  ;;  %s16_s10 = int_to_ptr.vmem [resolvable:$true] %s15_s10 }
   0x5   :  { %s692_s11 = scalar_lea.vmem %s16_s10, 64  ;;  %s696_s12 = scalar_lea.vmem %s16_s10, 128 }
   0x6   :  { %p693_p0 = scmp.ne.s32.totalorder %s16_s10, %s692_s11  ;;  %p697_p1 = scmp.lt.s32.totalorder %s16_s10, %s16_s10 }
   0x7   :  { %p698_p2 = scmp.lt.s32.totalorder %s696_s12, %s692_s11 }
   0x9   :  { %p699_p3 = por %p698_p2, %p697_p1 }
   0xb   :  { %p700_p4 = pnand %p699_p3, %p693_p0 }
   0xd   :  { %703 = shalt.err (!%p700_p4)
}
   0xe   :  { %s751_s13 = smov 64   ;;  %s752_s14 = smov 4  }
   0xf   :  { %21 = dma.hbm_to_vmem [thread:$0]  %s820_s0, 64, %s16_s10, [#allocation3], %s751_s13, %s751_s13, %s752_s14  }
  0x10   :  { %s753_s17 = smov [#allocation5]  }
  0x11   :  { %s28_s18 = sshll.u32 %s753_s17, 4  ;;  %s29_s18 = int_to_ptr.vmem [resolvable:$true] %s28_s18 }
  0x12   :  { %s712_s19 = scalar_lea.vmem %s29_s18, 128  ;;  %p717_p6 = scmp.lt.s32.totalorder %s29_s18, %s29_s18 }
  0x13   :  { %p713_p5 = scmp.ne.s32.totalorder %s29_s18, %s712_s19  ;;  %p718_p7 = scmp.lt.s32.totalorder %s712_s19, %s712_s19 }
  0x15   :  { %p719_p8 = por %p718_p7, %p717_p6 }
  0x17   :  { %p720_p9 = pnand %p719_p8, %p713_p5 }
  0x19   :  { %723 = shalt.err (!%p720_p9)
}
  0x1a   :  { %31 = dma.hbm_to_vmem [thread:$0]  %s821_s1, 128, %s29_s18, [#allocation6]  }
  0x1b   :  { %744 = dma.done.wait [#allocation3], 128  }
  0x1c   :  { %745 = vsyncadd [#allocation3], 4294967168 }
  0x1d   :  { %746 = dma.done.wait [#allocation6], 128  }
  0x1e   :  { %747 = vsyncadd [#allocation6], 4294967168  ;;  %v754_v0 = vmov 0.0   ;;  %vm755_vm0 = vmmov 0   ;;  %vm44_vm1 = vcmask 1044480   ;;  %vm40_vm2 = vcmask 39936  }
  0x1f   :  { %633 = vmatprep.subr.mxu0 %v754_v0  ;;  %635 = vmatprep.mubr.msk.f32.mxu0 %vm755_vm0, %v754_v0  ;;  %v39_v1 = vld [vmem:[#allocation5] sm:$0x1f]  ;;  %v38_v2 = vld [vmem:[#allocation2] sm:$0xff]  ;;  %v756_v42 = vmov 683565275  }
  0x20   :  { %638 = vmatprep.subr.mxu1 %v754_v0  ;;  %640 = vmatprep.mubr.msk.f32.mxu1 %vm755_vm0, %v754_v0  ;;  %v46_v3 = vsel %vm44_vm1, %v39_v1, 0  ;;  %v42_v4 = vsel %vm40_vm2, %v38_v2, 0  ;;  %v757_v44 = vmov 2475754826   ;;  %v758_v47 = vmov 2131351028  }
  0x21   :  { %v79_v5 = vand.u32 4294901760, %v46_v3  ;;  %v114_v6 = vand.u32 4294901760, %v42_v4  ;;  %v759_v50 = vmov 2102212464   ;;  %v760_v53 = vmov 920167782  }
  0x22   :  { %v761_v56 = vmov 1326507024  }
  0x23   :  { %634 = vmatpush3.msra.mxu0 %v79_v5  ;;  %v115_v7 = vsub.f32 %v42_v4, %v114_v6  ;;  %v156_v8 = vsub.f32 %v46_v3, %v79_v5 }
  0x24   :  { %643 = vmatprep.subr.mxu0 %v754_v0 }
  0x25   :  { %v116_v9 = vand.u32 4294901760, %v115_v7  ;;  %v157_v10 = vand.u32 4294901760, %v156_v8 }
  0x27   :  { %v117_v11 = vsub.f32 %v115_v7, %v116_v9  ;;  %v158_v12 = vsub.f32 %v156_v8, %v157_v10 }
  0x29   :  { %v118_v13 = vand.u32 4294901760, %v117_v11  ;;  %v159_v14 = vand.u32 4294901760, %v158_v12 }
  0x2b   :  { %636 = vmatmul.mubr.f32.vlgmr.msra.gmra.mxu0 %v118_v13  ;;  %639 = vmatpush3.msra.mxu1 %v159_v14 }
  0x2c   :  { %644 = vmatpush3.msra.mxu0 %v156_v8  ;;  %641 = vmatmul.mubr.f32.vlgmr.msra.gmra.mxu1 %v114_v6 }
  0x2d   :  { %648 = vmatprep.subr.mxu1 %v754_v0  ;;  %645 = vmatprep.mubr.msk.f32.mxu0 %vm755_vm0, %v754_v0 }
  0x2e   :  { %649 = vmatpush3.msra.mxu1 %v79_v5  ;;  %653 = vmatprep.subr.mxu0 %v754_v0 }
  0x2f   :  { %646 = vmatmul.mubr.f32.vlgmr.msra.gmra.mxu0 %v115_v7  ;;  %650 = vmatprep.mubr.msk.f32.mxu1 %vm755_vm0, %v754_v0 }
  0x30   :  { %654 = vmatpush3.msra.mxu0 %v157_v10  ;;  %651 = vmatmul.mubr.f32.vlgmr.msra.gmra.mxu1 %v116_v9 }
  0x31   :  { %658 = vmatprep.subr.mxu1 %v754_v0  ;;  %655 = vmatprep.mubr.msk.f32.mxu0 %vm755_vm0, %v754_v0 }
  0x32   :  { %659 = vmatpush3.msra.mxu1 %v79_v5  ;;  %660 = vmatprep.mubr.msk.f32.mxu1 %vm755_vm0, %v754_v0 }
  0x33   :  { %656 = vmatmul.mubr.f32.vlgmr.msra.gmra.mxu0 %v114_v6 }
  0x34   :  { %661 = vmatmul.mubr.f32.vlgmr.msra.gmra.mxu1 %v114_v6 }
  0xeb   :  { %v120_v15 = vpop.f32.mrf.mxu0 }
  0xec   :  { %v196_v16 = vpop.f32.mrf.mxu1 }
  0xed   :  { %v197_v17 = vadd.f32 %v196_v16, %v120_v15  ;;  %v637_v18 = vpop.f32.mrf.mxu0 }
  0xee   :  { %v642_v19 = vpop.f32.mrf.mxu1 }
  0xef   :  { %v270_v20 = vpop.f32.mrf.mxu0 }
  0xf0   :  { %v271_v21 = vadd.f32 %v270_v20, %v197_v17  ;;  %v344_v22 = vpop.f32.mrf.mxu1 }
  0xf1   :  { %v647_v23 = vpop.f32.mrf.mxu0 }
  0xf2   :  { %v345_v24 = vadd.f32 %v344_v22, %v271_v21  ;;  %v652_v25 = vpop.f32.mrf.mxu1 }
  0xf3   :  { %v418_v26 = vpop.f32.mrf.mxu0 }
  0xf4   :  { %v419_v27 = vadd.f32 %v418_v26, %v345_v24  ;;  %v490_v28 = vpop.f32.mrf.mxu1 }
  0xf5   :  { %v657_v29 = vpop.f32.mrf.mxu0 }
  0xf6   :  { %v793_v30 = vadd.f32 %v490_v28, %v419_v27  ;;  %v662_v31 = vpop.f32.mrf.mxu1 }
  0xf8   :  { %v497_v32 = vand.u32 2139095040, %v793_v30  ;;  %v494_v36 = vand.u32 2147483647, %v793_v30  ;;  %vm496_vm10 = vcmp.lt.s32.totalorder %v793_v30, 0  ;;  %vm586_vm15 = vweird.f32 %v793_v30 }
  0xfa   :  { %v498_v33 = vshrl.u32 %v497_v32, 23  ;;  %v501_v39 = vand.u32 8388607, %v494_v36  ;;  %vm495_vm11 = vcmp.le.f32.partialorder %v494_v36, 0.7853982 }
  0xfc   :  { %v617_v34 = vadd.s32 4294967169, %v498_v33  ;;  %v502_v58 = vor.u32 8388608, %v501_v39 }
  0xfe   :  { %v504_v35 = vadd.s32 1, %v617_v34  ;;  %v542_v8 = vshll.u32 %v502_v58, 8 }
 0x100   :  { %vm505_vm3 = vcmp.gt.s32.totalorder %v504_v35, 0 }
 0x101   :  { %v506_v37 = vsel %vm505_vm3, %v504_v35, 0 }
 0x102   :  { %v508_v38 = vand.u32 31, %v506_v37  ;;  %v507_v41 = vshrl.u32 %v506_v37, 5 }
 0x104   :  { %v509_v40 = vsub.s32 32, %v508_v38  ;;  %v511_v43 = vshll.u32 %v756_v42, %v508_v38  ;;  %v514_v45 = vshll.u32 %v757_v44, %v508_v38  ;;  %v517_v49 = vshll.u32 %v758_v47, %v508_v38 }
 0x105   :  { %v520_v52 = vshll.u32 %v759_v50, %v508_v38  ;;  %v523_v55 = vshll.u32 %v760_v53, %v508_v38  ;;  %vm526_vm4 = vcmp.lt.s32.totalorder %v507_v41, 1  ;;  %vm529_vm5 = vcmp.lt.s32.totalorder %v507_v41, 4 }
 0x106   :  { %v512_v46 = vshrl.u32 %v757_v44, %v509_v40  ;;  %v515_v48 = vshrl.u32 %v758_v47, %v509_v40  ;;  %v518_v51 = vshrl.u32 %v759_v50, %v509_v40  ;;  %v521_v54 = vshrl.u32 %v760_v53, %v509_v40 }
 0x107   :  { %v524_v57 = vshrl.u32 %v761_v56, %v509_v40  ;;  %v510_v3 = vshrl.u32 %v756_v42, %v509_v40  ;;  %vm528_vm6 = vcmp.lt.s32.totalorder %v507_v41, 3  ;;  %vm527_vm7 = vcmp.lt.s32.totalorder %v507_v41, 2 }
 0x108   :  { %v513_v59 = vor.u32 %v512_v46, %v511_v43  ;;  %v516_v60 = vor.u32 %v515_v48, %v514_v45  ;;  %v519_v61 = vor.u32 %v518_v51, %v517_v49  ;;  %v522_v62 = vor.u32 %v521_v54, %v520_v52 }
 0x109   :  { %v525_v63 = vor.u32 %v524_v57, %v523_v55 }
 0x10a   :  { %v531_v0 = vsel %vm529_vm5, %v519_v61, 2102212464  ;;  %v534_v1 = vsel %vm526_vm4, %v513_v59, %v516_v60  ;;  %v538_v2 = vsel %vm526_vm4, %v516_v60, %v519_v61  ;;  %v535_v4 = vsel %vm529_vm5, %v522_v62, 920167782 }
 0x10b   :  { %v539_v5 = vsel %vm529_vm5, %v525_v63, 1326507024  ;;  %v536_v6 = vsel %vm528_vm6, %v519_v61, %v535_v4  ;;  %v530_v9 = vsel %vm526_vm4, %v510_v3, %v513_v59  ;;  %v532_v10 = vsel %vm528_vm6, %v516_v60, %v531_v0 }
 0x10c   :  { %v540_v7 = vsel %vm528_vm6, %v522_v62, %v539_v5  ;;  %v537_v11 = vsel %vm527_vm7, %v534_v1, %v536_v6  ;;  %v533_v17 = vsel %vm527_vm7, %v530_v9, %v532_v10 }
 0x10d   :  { %v541_v12 = vsel %vm527_vm7, %v538_v2, %v540_v7  ;;  %v802_v15 = vmul.u32.u64.low %v542_v8, %v537_v11  ;;  %v803_v16 = vmul.u32.u64.high %v542_v8, %v537_v11, %v802_v15  ;;  %v549_v19 = vmul.u32 %v542_v8, %v533_v17 }
 0x10e   :  { %v799_v13 = vmul.u32.u64.low %v542_v8, %v541_v12  ;;  %v800_v14 = vmul.u32.u64.high %v542_v8, %v541_v12, %v799_v13 }
 0x10f   :  { %v552_v18 = vadd.s32 1, %v803_v16 }
 0x110   :  { %vm551_vm8 = vc.u32 %v800_v14, %v802_v15  ;;  %v550_v32 = vadd.s32 %v802_v15, %v800_v14 }
 0x111   :  { %v553_v20 = vsel %vm551_vm8, %v552_v18, %v803_v16 }
 0x112   :  { %v554_v21 = vadd.s32 %v553_v20, %v549_v19 }
 0x114   :  { %v555_v22 = vadd.s32 536870912, %v554_v21 }
 0x116   :  { %v556_v23 = vshrl.u32 %v555_v22, 30 }
 0x118   :  { %v557_v24 = vshll.u32 %v556_v23, 30  ;;  %v580_v46 = vsub.s32 4, %v556_v23 }
 0x11a   :  { %v558_v25 = vsub.s32 %v554_v21, %v557_v24  ;;  %v581_v49 = vsel %vm496_vm10, %v580_v46, %v556_v23 }
 0x11b   :  { %v583_v50 = vsel %vm495_vm11, 0, %v581_v49 }
 0x11c   :  { %v560_v26 = vsub.s32 0, %v558_v25  ;;  %v587_v51 = vadd.s32 3, %v583_v50 }
 0x11e   :  { %v618_v27 = vmin.u32 %v560_v26, %v558_v25  ;;  %v588_v52 = vand.u32 3, %v587_v51 }
 0x120   :  { %v562_v28 = vclz %v618_v27  ;;  %vm593_vm12 = vcmp.eq.s32.totalorder %v588_v52, 2  ;;  %vm590_vm13 = vcmp.eq.s32.totalorder %v588_v52, 0  ;;  %vm589_vm14 = vcmp.lt.s32.totalorder %v588_v52, 2 }
 0x122   :  { %v619_v29 = vadd.s32 4294967294, %v562_v28 }
 0x124   :  { %vm620_vm9 = vcmp.lt.s32.totalorder %v619_v29, 0 }
 0x125   :  { %v565_v31 = vsel %vm620_vm9, 0, %v619_v29 }
 0x126   :  { %v566_v33 = vsub.s32 32, %v565_v31  ;;  %v570_v34 = vsub.s32 4294967266, %v565_v31  ;;  %v567_v35 = vshll.u32 %v558_v25, %v565_v31 }
 0x128   :  { %v568_v37 = vshrl.u32 %v550_v32, %v566_v33  ;;  %v571_v38 = vadd.s32 127, %v570_v34 }
 0x12a   :  { %v569_v39 = vor.u32 %v568_v37, %v567_v35  ;;  %v572_v40 = vshll.u32 %v571_v38, 23 }
 0x12c   :  { %v573_v41 = vor.u32 4788187, %v572_v40  ;;  %v576_v43 = vcvt.s32.f32 %v569_v39 }
 0x12e   :  { %v574_v42 = vand.u32 2147483647, %v573_v41 }
 0x130   :  { %v577_v44 = vmul.f32 %v576_v43, %v574_v42 }
 0x132   :  { %v578_v45 = vxor.u32 2147483648, %v577_v44 }
 0x134   :  { %v579_v47 = vsel %vm496_vm10, %v578_v45, %v577_v44 }
 0x135   :  { %v582_v48 = vsel %vm495_vm11, %v793_v30, %v579_v47 }
 0x136   :  { %680 = vcosq.f32 %v582_v48 }
 0x137   :  { %682 = vsinq.f32 %v582_v48 }
 0x143   :  { %v681_v53 = vpop.eup %680 }
 0x144   :  { %v683_v54 = vpop.eup %682  ;;  %v594_v55 = vxor.u32 2147483648, %v681_v53 }
 0x145   :  { %v591_v56 = vxor.u32 2147483648, %v683_v54 }
 0x146   :  { %v595_v57 = vsel %vm593_vm12, %v594_v55, %v683_v54 }
 0x147   :  { %v592_v58 = vsel %vm590_vm13, %v681_v53, %v591_v56 }
 0x148   :  { %v596_v36 = vsel %vm589_vm14, %v592_v58, %v595_v57 }
 0x149   :  { %v597_v59 = vsel %vm586_vm15, nan, %v596_v36 }
 0x14a   :  { %598 = vst [vmem:[#allocation7] sm:$0xff] %v597_v59 }
 0x14b   :  { %603 = vsyncadd [#allocation4], 64  ;;  %s762_s0 = smov [#allocation7]  }
 0x14c   :  { %s604_s1 = sshll.u32 %s762_s0, 4  ;;  %s605_s1 = int_to_ptr.vmem [resolvable:$true] %s604_s1 }
 0x14d   :  { %s724_s22 = scalar_lea.vmem %s605_s1, 64  ;;  %s728_s23 = scalar_lea.vmem %s605_s1, 128 }
 0x14e   :  { %p725_p10 = scmp.ne.s32.totalorder %s605_s1, %s724_s22  ;;  %p729_p11 = scmp.lt.s32.totalorder %s605_s1, %s605_s1 }
 0x14f   :  { %p730_p12 = scmp.lt.s32.totalorder %s728_s23, %s724_s22 }
 0x151   :  { %p731_p13 = por %p730_p12, %p729_p11 }
 0x153   :  { %p732_p0 = pnand %p731_p13, %p725_p10 }
 0x155   :  { %735 = shalt.err (!%p732_p0)
}
 0x156   :  { %610 = dma.vmem_to_hbm [thread:$0]  %s605_s1, 64, %s822_s2, [#allocation4], %s751_s13, %s751_s13, %s752_s14  }
 0x157   :  { %748 = dma.done.wait [#allocation4], 128  }
 0x158   :  { %749 = vsyncadd [#allocation4], 4294967168 }
 0x159   :  { %614 = vsyncpa [#allocation3], 1 }
 0x15a   :  { %615 = vsyncpa [#allocation6], 1 }
 0x15b   :  { %616 = vsyncpa [#allocation4], 1 }

</bundles_post_ra>
